<compile_context>
chip_gen: v7x
topology: tpu7x:2x2x1
jax: 0.10.0
libtpu: 0.0.40
codegen_flags: <defaults>
</compile_context>

<pallas_src>
import functools

import jax
import jax.numpy as jnp
from jax.experimental import pallas as pl
from jax.experimental.pallas import tpu as pltpu


# ---------------------------------------------------------------------------
# Phase 1: per-channel gate  s = sigmoid(FC2(relu(FC1([att, mean_hw(x)]))))
# ---------------------------------------------------------------------------
def gate_kernel(x_ref, att_ref, w1a_ref, w1p_ref, b1_ref, w2t_ref, b2_ref,
                s_ref, acc_ref, *, inv_hw):
    # x_ref:   (1, C, hw_tile)  native dtype
    # att_ref: (1, 1, A)        f32
    # w1a_ref: (A, H1), w1p_ref: (C, H1), b1_ref: (1, H1)
    # w2t_ref: (H1, C), b2_ref: (1, C)
    # s_ref:   (1, 1, C)        f32 output (gate)
    # acc_ref: (1, C)           f32 VMEM scratch (spatial-sum accumulator)
    k = pl.program_id(1)

    @pl.when(k == 0)
    def _init():
        acc_ref[...] = jnp.zeros_like(acc_ref)

    # Accumulate the spatial sum in f32 (HW is the lane axis).
    acc_ref[...] += jnp.sum(x_ref[...].astype(jnp.float32), axis=-1)

    @pl.when(k == pl.num_programs(1) - 1)
    def _finalize():
        pooled = acc_ref[...] * inv_hw                  # (1, C)  mean over H*W
        att = att_ref[0].astype(jnp.float32)            # (1, A)
        # Split matmul instead of concat([att, pooled]) @ W1.T (lane-aligned,
        # avoids XLU shuffles from a misaligned concatenate).
        h = jnp.dot(att, w1a_ref[...], preferred_element_type=jnp.float32)
        h = h + jnp.dot(pooled, w1p_ref[...], preferred_element_type=jnp.float32)
        h = jnp.maximum(h + b1_ref[...], 0.0)           # (1, H1)
        s = jnp.dot(h, w2t_ref[...], preferred_element_type=jnp.float32)
        s = jax.nn.sigmoid(s + b2_ref[...])             # (1, C)
        s_ref[0] = s


# ---------------------------------------------------------------------------
# Phase 2: channel gating   out[b, c, :] = s[b, c] * x[b, c, :]
# ---------------------------------------------------------------------------
def gating_kernel(s_ref, x_ref, o_ref):
    # s_ref: (1, C, 1) f32 (sublane broadcast);  x_ref/o_ref: (1, C, hw_tile)
    o_ref[...] = (s_ref[...] * x_ref[...].astype(jnp.float32)).astype(o_ref.dtype)


def _pick_hw_tile(hw, c, itemsize, vmem_tile_budget=2 * 1024 * 1024):
    """Largest lane-dense tile (multiple of 128) dividing HW whose (C, tile)
    slab stays within ~2 MiB, so double-buffered in+out tiles fit comfortably
    under every generation's scoped VMEM (incl. v7x's 64 MiB physical)."""
    for t in (4096, 2048, 1024, 512, 256, 128):
        if hw % t == 0 and c * t * itemsize <= vmem_tile_budget:
            return t
    return hw  # fall back to the full (untiled) spatial extent


def al_de_forward(x_nchw, attention, w1, b1, w2, b2, *, hw_tile=None):
    """AL_De_Module forward.

    x_nchw:    (B, C, H, W)  kept in its native dtype end-to-end
    attention: (B, ...)      flattened to (B, A), cast to f32 (as in .float())
    w1: (H1, A + C), b1: (H1,)   [PyTorch nn.Linear layout, H1 = C // 16]
    w2: (C, H1),     b2: (C,)
    """
    B, C, H, W = x_nchw.shape
    attention = attention.reshape(B, -1).astype(jnp.float32)
    A = attention.shape[1]
    H1 = w1.shape[0]
    HW = H * W

    x_flat = x_nchw.reshape(B, C, HW)                # native dtype, HW on lanes
    att3 = attention.reshape(B, 1, A)

    # Pre-split / pre-transpose FC_1 weights: first A input columns act on the
    # attention vector, the remaining C on the pooled channels (concat order).
    w1t = jnp.asarray(w1, jnp.float32).T             # (A + C, H1)
    w1a = w1t[:A]                                    # (A, H1)
    w1p = w1t[A:]                                    # (C, H1)
    b1r = jnp.asarray(b1, jnp.float32).reshape(1, H1)
    w2t = jnp.asarray(w2, jnp.float32).T             # (H1, C)
    b2r = jnp.asarray(b2, jnp.float32).reshape(1, C)

    if hw_tile is None:
        hw_tile = _pick_hw_tile(HW, C, x_flat.dtype.itemsize)
    assert HW % hw_tile == 0, "hw_tile must divide H*W"
    n_hw = HW // hw_tile

    # ---- Phase 1: compute the per-channel gate s, shape (B, 1, C) ----------
    s = pl.pallas_call(
        functools.partial(gate_kernel, inv_hw=1.0 / HW),
        out_shape=jax.ShapeDtypeStruct((B, 1, C), jnp.float32),
        grid=(B, n_hw),
        in_specs=[
            pl.BlockSpec((1, C, hw_tile), lambda b, k: (b, 0, k)),
            pl.BlockSpec((1, 1, A), lambda b, k: (b, 0, 0)),
            pl.BlockSpec((A, H1), lambda b, k: (0, 0)),
            pl.BlockSpec((C, H1), lambda b, k: (0, 0)),
            pl.BlockSpec((1, H1), lambda b, k: (0, 0)),
            pl.BlockSpec((H1, C), lambda b, k: (0, 0)),
            pl.BlockSpec((1, C), lambda b, k: (0, 0)),
        ],
        out_specs=pl.BlockSpec((1, 1, C), lambda b, k: (b, 0, 0)),
        scratch_shapes=[pltpu.VMEM((1, C), jnp.float32)],
        compiler_params=pltpu.CompilerParams(
            dimension_semantics=("parallel", "arbitrary")),
    )(x_flat, att3, w1a, w1p, b1r, w2t, b2r)

    # (B, 1, C) -> (B, C, 1): same element order, sublane-broadcastable tile.
    s3 = s.reshape(B, C, 1)

    # ---- Phase 2: stream x through VMEM and apply the channel gate ---------
    out_flat = pl.pallas_call(
        gating_kernel,
        out_shape=jax.ShapeDtypeStruct((B, C, HW), x_flat.dtype),
        grid=(B, n_hw),
        in_specs=[
            pl.BlockSpec((1, C, 1), lambda b, k: (b, 0, 0)),
            pl.BlockSpec((1, C, hw_tile), lambda b, k: (b, 0, k)),
        ],
        out_specs=pl.BlockSpec((1, C, hw_tile), lambda b, k: (b, 0, k)),
        compiler_params=pltpu.CompilerParams(
            dimension_semantics=("parallel", "parallel")),
    )(s3, x_flat)

    return out_flat.reshape(B, C, H, W)


def reference_forward(x, attention, w1, b1, w2, b2):
    B, C, H, W = x.shape
    attention = attention.reshape(B, -1).astype(jnp.float32)
    pooled = jnp.mean(x.astype(jnp.float32), axis=(2, 3))
    in_fc = jnp.concatenate([attention, pooled], axis=1)
    h = jax.nn.relu(in_fc @ jnp.asarray(w1, jnp.float32).T + b1)
    s = jax.nn.sigmoid(h @ jnp.asarray(w2, jnp.float32).T + b2)
    return (s[:, :, None, None] * x.astype(jnp.float32)).astype(x.dtype)


if __name__ == "__main__":
    # channel_size must be >= 16 so that channel_size // 16 >= 1.
    B, C, H, W = 2, 32, 32, 32
    ATT = 16
    H1 = C // 16  # hidden size of FC_1

    key = jax.random.PRNGKey(0)
    k_x, k_a, k_w1, k_b1, k_w2, k_b2 = jax.random.split(key, 6)

    x = jax.random.normal(k_x, (B, C, H, W), dtype=jnp.float32)
    attention = jax.random.normal(k_a, (B, ATT), dtype=jnp.float32)

    # Deterministic synthetic parameters (PyTorch nn.Linear layout: (out, in)).
    w1 = 0.1 * jax.random.normal(k_w1, (H1, ATT + C), dtype=jnp.float32)
    b1 = 0.1 * jax.random.normal(k_b1, (H1,), dtype=jnp.float32)
    w2 = 0.1 * jax.random.normal(k_w2, (C, H1), dtype=jnp.float32)
    b2 = 0.1 * jax.random.normal(k_b2, (C,), dtype=jnp.float32)

    # hw_tile=256 -> 4 lane-dense spatial tiles: exercises the pipelined
    # reduction (gate kernel) and the tiled gating grid.
    out = al_de_forward(x, attention, w1, b1, w2, b2, hw_tile=256)
    out = jax.block_until_ready(out)

    ref = reference_forward(x, attention, w1, b1, w2, b2)
    assert out.shape == (B, C, H, W)
    assert out.dtype == x.dtype
    assert jnp.allclose(out, ref, atol=1e-5, rtol=1e-5), "mismatch vs reference"

    print("KERNEL_OK")
</pallas_src>

<mosaic_0001>
module attributes {stable_mosaic.version = 11 : i64} {
  func.func @gate_kernel(%arg0: i32, %arg1: i32, %arg2: memref<1x32x256xf32, #tpu.memory_space<vmem>>, %arg3: memref<1x1x16xf32, #tpu.memory_space<vmem>>, %arg4: memref<16x2xf32, #tpu.memory_space<vmem>>, %arg5: memref<32x2xf32, #tpu.memory_space<vmem>>, %arg6: memref<1x2xf32, #tpu.memory_space<vmem>>, %arg7: memref<2x32xf32, #tpu.memory_space<vmem>>, %arg8: memref<1x32xf32, #tpu.memory_space<vmem>>, %arg9: memref<1x1x32xf32, #tpu.memory_space<vmem>>, %arg10: memref<1x32xf32, #tpu.memory_space<vmem>>) attributes {dimension_semantics = [#tpu.dimension_semantics<parallel>, #tpu.dimension_semantics<arbitrary>], iteration_bounds = array<i64: 2, 4>, scalar_prefetch = 0 : i64, scratch_operands = 1 : i64, tpu.core_type = #tpu.core_type<tc>, window_params = [{transform_indices = @transform_0, window_bounds = array<i64: 1, 32, 256>}, {transform_indices = @transform_1, window_bounds = array<i64: 1, 1, 16>}, {pipeline_mode = #tpu.pipeline_mode<synchronous>, transform_indices = @transform_2, window_bounds = array<i64: 16, 2>}, {pipeline_mode = #tpu.pipeline_mode<synchronous>, transform_indices = @transform_3, window_bounds = array<i64: 32, 2>}, {pipeline_mode = #tpu.pipeline_mode<synchronous>, transform_indices = @transform_4, window_bounds = array<i64: 1, 2>}, {pipeline_mode = #tpu.pipeline_mode<synchronous>, transform_indices = @transform_5, window_bounds = array<i64: 2, 32>}, {pipeline_mode = #tpu.pipeline_mode<synchronous>, transform_indices = @transform_6, window_bounds = array<i64: 1, 32>}, {transform_indices = @transform_7, window_bounds = array<i64: 1, 1, 32>}]} {
    %c0_i32 = arith.constant 0 : i32
    %0 = arith.cmpi eq, %arg1, %c0_i32 : i32
    %1 = arith.extui %0 : i1 to i32
    %c0_i32_0 = arith.constant 0 : i32
    %2 = arith.cmpi ne, %1, %c0_i32_0 : i32
    scf.if %2 {
      %cst_8 = arith.constant 0.000000e+00 : f32
      %11 = vector.broadcast %cst_8 : f32 to vector<1x32xf32>
      %c0_9 = arith.constant 0 : index
      %c0_10 = arith.constant 0 : index
      %12 = vector.load %arg10[%c0_9, %c0_10] : memref<1x32xf32, #tpu.memory_space<vmem>>, vector<1x32xf32>
      tpu.vector_store %arg10[%c0_9, %c0_10], %11 {strides = array<i32>} : memref<1x32xf32, #tpu.memory_space<vmem>>, vector<1x32xf32>,
    } else {
    }
    %c0 = arith.constant 0 : index
    %c0_1 = arith.constant 0 : index
    %3 = vector.load %arg10[%c0, %c0_1] : memref<1x32xf32, #tpu.memory_space<vmem>>, vector<1x32xf32>
    %c0_2 = arith.constant 0 : index
    %c0_3 = arith.constant 0 : index
    %c0_4 = arith.constant 0 : index
    %4 = vector.load %arg2[%c0_2, %c0_3, %c0_4] : memref<1x32x256xf32, #tpu.memory_space<vmem>>, vector<1x32x256xf32>
    %cst = arith.constant dense<0.000000e+00> : vector<1x32xf32>
    %5 = vector.multi_reduction <add>, %4, %cst [2] : vector<1x32x256xf32> to vector<1x32xf32>
    %6 = arith.addf %3, %5 : vector<1x32xf32>
    %c0_5 = arith.constant 0 : index
    %c0_6 = arith.constant 0 : index
    %7 = vector.load %arg10[%c0_5, %c0_6] : memref<1x32xf32, #tpu.memory_space<vmem>>, vector<1x32xf32>
    tpu.vector_store %arg10[%c0_5, %c0_6], %6 {strides = array<i32>} : memref<1x32xf32, #tpu.memory_space<vmem>>, vector<1x32xf32>,
    %c3_i32 = arith.constant 3 : i32
    %8 = arith.cmpi eq, %arg1, %c3_i32 : i32
    %9 = arith.extui %8 : i1 to i32
    %c0_i32_7 = arith.constant 0 : i32
    %10 = arith.cmpi ne, %9, %c0_i32_7 : i32
    scf.if %10 {
      %c0_8 = arith.constant 0 : index
      %c0_9 = arith.constant 0 : index
      %11 = vector.load %arg10[%c0_8, %c0_9] : memref<1x32xf32, #tpu.memory_space<vmem>>, vector<1x32xf32>
      %cst_10 = arith.constant 9.765625E-4 : f32
      %12 = vector.broadcast %cst_10 : f32 to vector<1x32xf32>
      %13 = arith.mulf %11, %12 : vector<1x32xf32>
      %c0_11 = arith.constant 0 : index
      %c0_12 = arith.constant 0 : index
      %c0_13 = arith.constant 0 : index
      %14 = vector.load %arg3[%c0_11, %c0_12, %c0_13] : memref<1x1x16xf32, #tpu.memory_space<vmem>>, vector<1x1x16xf32>
      %15 = vector.shape_cast %14 : vector<1x1x16xf32> to vector<1x16xf32>
      %c0_14 = arith.constant 0 : index
      %c0_15 = arith.constant 0 : index
      %16 = vector.load %arg4[%c0_14, %c0_15] : memref<16x2xf32, #tpu.memory_space<vmem>>, vector<16x2xf32>
      %cst_16 = arith.constant dense<0.000000e+00> : vector<1x2xf32>
      %17 = tpu.matmul %15, %16, %cst_16 {dimension_numbers = #tpu.dot_dimension_numbers<[1], [0], [0], [1], [0, 0, 1, 1], [], []>} : vector<1x16xf32>, vector<16x2xf32>, vector<1x2xf32> -> vector<1x2xf32>
      %c0_17 = arith.constant 0 : index
      %c0_18 = arith.constant 0 : index
      %18 = vector.load %arg5[%c0_17, %c0_18] : memref<32x2xf32, #tpu.memory_space<vmem>>, vector<32x2xf32>
      %cst_19 = arith.constant dense<0.000000e+00> : vector<1x2xf32>
      %19 = tpu.matmul %13, %18, %cst_19 {dimension_numbers = #tpu.dot_dimension_numbers<[1], [0], [0], [1], [0, 0, 1, 1], [], []>} : vector<1x32xf32>, vector<32x2xf32>, vector<1x2xf32> -> vector<1x2xf32>
      %20 = arith.addf %17, %19 : vector<1x2xf32>
      %c0_20 = arith.constant 0 : index
      %c0_21 = arith.constant 0 : index
      %21 = vector.load %arg6[%c0_20, %c0_21] : memref<1x2xf32, #tpu.memory_space<vmem>>, vector<1x2xf32>
      %22 = arith.addf %20, %21 : vector<1x2xf32>
      %cst_22 = arith.constant 0.000000e+00 : f32
      %23 = vector.broadcast %cst_22 : f32 to vector<1x2xf32>
      %24 = arith.maximumf %22, %23 : vector<1x2xf32>
      %c0_23 = arith.constant 0 : index
      %c0_24 = arith.constant 0 : index
      %25 = vector.load %arg7[%c0_23, %c0_24] : memref<2x32xf32, #tpu.memory_space<vmem>>, vector<2x32xf32>
      %cst_25 = arith.constant dense<0.000000e+00> : vector<1x32xf32>
      %26 = tpu.matmul %24, %25, %cst_25 {dimension_numbers = #tpu.dot_dimension_numbers<[1], [0], [0], [1], [0, 0, 1, 1], [], []>} : vector<1x2xf32>, vector<2x32xf32>, vector<1x32xf32> -> vector<1x32xf32>
      %c0_26 = arith.constant 0 : index
      %c0_27 = arith.constant 0 : index
      %27 = vector.load %arg8[%c0_26, %c0_27] : memref<1x32xf32, #tpu.memory_space<vmem>>, vector<1x32xf32>
      %28 = arith.addf %26, %27 : vector<1x32xf32>
      %29 = arith.negf %28 : vector<1x32xf32>
      %30 = math.exp %29 : vector<1x32xf32>
      %cst_28 = arith.constant 1.000000e+00 : f32
      %31 = vector.broadcast %cst_28 : f32 to vector<1x32xf32>
      %32 = arith.addf %31, %30 : vector<1x32xf32>
      %33 = arith.divf %31, %32 : vector<1x32xf32>
      %c0_29 = arith.constant 0 : index
      %c0_30 = arith.constant 0 : index
      %c0_31 = arith.constant 0 : index
      %34 = vector.load %arg9[%c0_29, %c0_30, %c0_31] : memref<1x1x32xf32, #tpu.memory_space<vmem>>, vector<1x1x32xf32>
      %35 = vector.shape_cast %34 : vector<1x1x32xf32> to vector<1x32xf32>
      %36 = vector.shape_cast %33 : vector<1x32xf32> to vector<1x1x32xf32>
      tpu.vector_store %arg9[%c0_29, %c0_30, %c0_31], %36 {strides = array<i32>} : memref<1x1x32xf32, #tpu.memory_space<vmem>>, vector<1x1x32xf32>,
    } else {
    }
    return
  }
  func.func @transform_0(%arg0: i32, %arg1: i32) -> (i32, i32, i32) {
    %c0_i32 = arith.constant 0 : i32
    %c0_i32_0 = arith.constant 0 : i32
    return %arg0, %c0_i32, %arg1 : i32, i32, i32
  }
  func.func @transform_1(%arg0: i32, %arg1: i32) -> (i32, i32, i32) {
    %c0_i32 = arith.constant 0 : i32
    %c0_i32_0 = arith.constant 0 : i32
    %c0_i32_1 = arith.constant 0 : i32
    return %arg0, %c0_i32, %c0_i32_0 : i32, i32, i32
  }
  func.func @transform_2(%arg0: i32, %arg1: i32) -> (i32, i32) {
    %c0_i32 = arith.constant 0 : i32
    %c0_i32_0 = arith.constant 0 : i32
    %c0_i32_1 = arith.constant 0 : i32
    return %c0_i32, %c0_i32_0 : i32, i32
  }
  func.func @transform_3(%arg0: i32, %arg1: i32) -> (i32, i32) {
    %c0_i32 = arith.constant 0 : i32
    %c0_i32_0 = arith.constant 0 : i32
    %c0_i32_1 = arith.constant 0 : i32
    return %c0_i32, %c0_i32_0 : i32, i32
  }
  func.func @transform_4(%arg0: i32, %arg1: i32) -> (i32, i32) {
    %c0_i32 = arith.constant 0 : i32
    %c0_i32_0 = arith.constant 0 : i32
    %c0_i32_1 = arith.constant 0 : i32
    return %c0_i32, %c0_i32_0 : i32, i32
  }
  func.func @transform_5(%arg0: i32, %arg1: i32) -> (i32, i32) {
    %c0_i32 = arith.constant 0 : i32
    %c0_i32_0 = arith.constant 0 : i32
    %c0_i32_1 = arith.constant 0 : i32
    return %c0_i32, %c0_i32_0 : i32, i32
  }
  func.func @transform_6(%arg0: i32, %arg1: i32) -> (i32, i32) {
    %c0_i32 = arith.constant 0 : i32
    %c0_i32_0 = arith.constant 0 : i32
    %c0_i32_1 = arith.constant 0 : i32
    return %c0_i32, %c0_i32_0 : i32, i32
  }
  func.func @transform_7(%arg0: i32, %arg1: i32) -> (i32, i32, i32) {
    %c0_i32 = arith.constant 0 : i32
    %c0_i32_0 = arith.constant 0 : i32
    %c0_i32_1 = arith.constant 0 : i32
    return %arg0, %c0_i32, %c0_i32_0 : i32, i32, i32
  }
}

</mosaic_0001>

<bundles_post_ra>
// kernel: tpu_custom_call.1
= control target key start
LH: loop header
LB: loop body
LE: loop exit
PB: predicated region body
PF: predicated region fallthrough
CT: control target
= control target key end

     0   :  { %s1837_s0 = inlined_call_operand.hbm [shape: f32[2,32,1024], index: 0, kind: input, shape index: {}]   ;;  %s1838_s1 = inlined_call_operand.vmem [shape: f32[2,1,16], index: 1, kind: input, shape index: {}]   ;;  %s1839_s2 = inlined_call_operand.vmem [shape: f32[16,2], index: 2, kind: input, shape index: {}]   ;;  %s1840_s3 = inlined_call_operand.vmem [shape: f32[32,2], index: 3, kind: input, shape index: {}]   ;;  %s1841_s4 = inlined_call_operand.vmem [shape: f32[1,2], index: 4, kind: input, shape index: {}]   ;;  %s1842_s5 = inlined_call_operand.vmem [shape: f32[2,32], index: 5, kind: input, shape index: {}]   ;;  %s1843_s6 = inlined_call_operand.vmem [shape: f32[1,32], index: 6, kind: input, shape index: {}]   ;;  %s1844_s7 = inlined_call_operand.hbm [shape: f32[2,1,32], index: 7, kind: output, shape index: {}]  }
   0x1   :  { %1852 = sst [smem:[#allocation14_spill]] %s1843_s6 }
   0x2   :  { %1853 = sst [smem:[#allocation15_spill]] %s1844_s7 }
   0x3   :  { %12 = vsyncpa [#allocation4], 0 }
   0x4   :  { %14 = vsyncpa [#allocation4 + $0x1], 0 }
   0x5   :  { %15 = vsyncpa [#allocation5], 0 }
   0x6   :  { %17 = vsyncpa [#allocation5 + $0x1], 0  ;;  %s1476_s24 = smov 0   ;;  %s1478_s25 = smov 0  }
   0x7   :  { %s1480_s26 = smov 0   ;;  %s1482_s27 = smov 0  }
   0x8   :  { %s1484_s28 = smov 0   ;;  %s1486_s29 = smov 0  }
   0x9   :  { %s1488_s30 = smov 0   ;;  %s1490_s8 = smov 0  }
   0xa   :  { %s1492_s9 = smov 0   ;;  %s1494_s10 = smov 0  }
   0xb   :  { %s1496_s11 = smov 0  }
   0xc LB: > { %1854 = sst [smem:[#allocation9_spill]] %s1403_s29  ;;  %s1092_s12 = sadd.s32 4294967295, %s1423_s11   ;;  %s1423_s11 = sphi %s1496_s11, %s23_s11   ;;  %s1419_s10 = sphi %s1494_s10, %s1882_s10   ;;  %s1415_s9 = sphi %s1492_s9, %s1881_s9   ;;  %s1411_s8 = sphi %s1490_s8, %s1880_s8   ;;  %s1407_s30 = sphi %s1488_s30, %s1879_s30   ;;  %s1403_s29 = sphi %s1486_s29, %s1871_s29   ;;  %s1399_s28 = sphi %s1484_s28, %s1878_s28   ;;  %s1395_s27 = sphi %s1482_s27, %s1877_s27   ;;  %s1391_s26 = sphi %s1480_s26, %s1876_s26   ;;  %s1387_s25 = sphi %s1478_s25, %s1875_s25   ;;  %s1383_s24 = sphi %s1476_s24, %s1874_s24  }
   0xd   : > { %s1093_s13 = sadd.s32 4294967294, %s1423_s11   ;;  %s32_s14 = sadd.s32 1, %s1415_s9 }
   0xe   : > { %s35_s15 = sadd.s32 1, %s1419_s10  ;;  %p33_p0 = scmp.ge.s32.totalorder %s32_s14, 4 }
   0xf   : > { %s44_s16 = sadd.s32 1, %s1403_s29  ;;  %p51_p1 = scmp.ne.s32.totalorder %s1403_s29, %s1399_s28 }
  0x10   : > { %p52_p2 = scmp.eq.s32.totalorder %s1423_s11, 0  ;;  %s1884_s14 = smov (%p33_p0, %s32_s14), 0 }
  0x11   : > { %1855 = sst [smem:[#allocation10_spill]] %s1884_s14  ;;  %s1886_s15 = smov (!%p33_p0, %s35_s15), %s1419_s10 }
  0x12   : > { %s40_s17 = ssub.s32 %s1415_s9, %s1884_s14  ;;  %p1542_p3 = por %p52_p2, %p51_p1 }
  0x13   : > { %p37_p4 = scmp.ge.s32.totalorder %s1886_s15, 2  ;;  %p57_p5 = scmp.ne.s32.totalorder %s1399_s28, %s1395_s27 }
  0x14   : > { %p58_p6 = scmp.eq.s32.totalorder %s1092_s12, 0  ;;  %s201_s19 = sadd.s32 1, %s1391_s26 }
  0x15   : > { %s1888_s15 = smov (%p37_p4, %s1886_s15), 0  ;;  %p211_p8 = scmp.ne.s32.totalorder %s1391_s26, %s1387_s25 }
  0x16   : > { %1857 = sst [smem:[#allocation11_spill]] %s1888_s15  ;;  %p1550_p7 = por %p58_p6, %p57_p5 }
  0x17   : > { %s39_s21 = ssub.s32 %s1419_s10, %s1888_s15  ;;  %p212_p9 = scmp.eq.s32.totalorder %s1092_s12, 7 }
  0x18   : > { %s41_s22 = sor.u32 %s40_s17, %s39_s21  ;;  %p199_p10 = scmp.eq.s32.totalorder %s39_s21, 0 }
  0x19   : > { %p42_p11 = scmp.eq.s32.totalorder %s41_s22, 0  ;;  %p1558_p12 = por %p212_p9, %p211_p8 }
  0x1a   : > { %s1563_s27 = scalar_select %p199_p10, %s1391_s26, %s201_s19  }
  0x1b   : > { %s1859_s23 = scalar_select %p1558_p12, 1, 0 }
  0x1c   : > { %s1566_s14 = scalar_select %p42_p11, %s1403_s29, %s44_s16  }
  0x1d   : > { %1860 = sst [smem:[#allocation12_spill]] %s1859_s23  ;;  %p217_p13 = scmp.ne.s32.totalorder %s1387_s25, %s1383_s24 }
  0x1e   : > { %1861 = sst [smem:[#allocation13_spill]] %s1566_s14  ;;  %p218_p0 = scmp.eq.s32.totalorder %s1093_s13, 7 }
  0x1f   : > { %p1166_p1 = scmp.lt.s32.totalorder %s1423_s11, 8  ;;  %s253_s12 = sand.u32 1, %s1403_s29  }
  0x20   : > { %p1571_p2 = por %p218_p0, %p217_p13  ;;  %s1096_s17 = sshll.u32 %s253_s12, 6 }
  0x21   : > { %s1097_s21 = sshll.u32 %s1415_s9, 1  ;;  %s1098_s22 = sshll.u32 %s1419_s10, 5 }
  0x22   : > { %s1862_s7 = scalar_select %p1571_p2, 1, 0 }
  0x23   : > { %s257_s15 = scalar_lea.vmem [#allocation3], %s1096_s17  ;;  %s263_s23 = sadd.s32 %s1098_s22, %s1097_s21 }
  0x24   : > { %s266_s6 = sshll.u32 %s257_s15, 4  ;;  %s1099_s19 = sshll.u32 %s263_s23, 7  ;;  %s1578_s6 = int_to_ptr.vmem [resolvable:$true] %s266_s6 }
  0x25   : > { %p1582_p4 = pnand %p1166_p1, %p1542_p3  ;;  %s1589_s29 = scalar_lea.hbm %s1837_s0, %s1099_s19 }
  0x26   : > { %s1592_s15 = scalar_lea.sflag [#allocation4], %s253_s12  ;;  %s1271_s23 = scalar_lea.hbm %s1589_s29, 1024 }
  0x27   : > { %p1272_p6 = scmp.ne.s32.totalorder %s1589_s29, %s1271_s23  ;;  %p1273_p3 = pneg %p1582_p4 }
  0x28   : > { %s1276_s17 = scalar_lea.hbm %s1837_s0, 8192  ;;  %p1277_p10 = scmp.lt.u32.totalorder %s1589_s29, %s1837_s0 }
  0x29   : > { %p1274_p8 = pnand %p1273_p3, %p1272_p6  ;;  %p1278_p11 = scmp.lt.u32.totalorder %s1276_s17, %s1271_s23 }
  0x2a   : > { %p1280_p0 = scmp.lt.u32.totalorder %s1271_s23, %s1589_s29 }
  0x2b   : > { %p1275_p9 = pneg %p1274_p8  ;;  %p1279_p13 = por %p1278_p11, %p1277_p10 }
  0x2d   : > { %p1281_p1 = por %p1280_p0, %p1279_p13 }
  0x2f   : > { %p1282_p5 = pnand %p1281_p1, %p1275_p9 }
  0x31   : > { %1285 = shalt.err (!%p1282_p5)
}
  0x32   : > { %s1286_s12 = scalar_lea.vmem %s1578_s6, 1024  ;;  %s1425_s19 = smov [#allocation3]  }
  0x33   : > { %p1287_p6 = scmp.ne.s32.totalorder %s1578_s6, %s1286_s12  ;;  %s1291_s13 = sshll.u32 %s1425_s19, 4  ;;  %s1292_s13 = int_to_ptr.vmem [resolvable:$false] %s1291_s13 }
  0x34   : > { %s1293_s14 = scalar_lea.vmem %s1292_s13, 2048  ;;  %p1294_p12 = scmp.lt.s32.totalorder %s1578_s6, %s1292_s13 }
  0x35   : > { %p1289_p8 = pnand %p1287_p6, %p1273_p3  ;;  %p1295_p10 = scmp.lt.s32.totalorder %s1293_s14, %s1286_s12 }
  0x37   : > { %p1290_p2 = pneg %p1289_p8  ;;  %p1296_p11 = por %p1295_p10, %p1294_p12 }
  0x39   : > { %p1297_p13 = pnand %p1296_p11, %p1290_p2 }
  0x3b   : > { %1300 = shalt.err (!%p1297_p13)
}
  0x3c   : > { %s1426_s23 = smov 1024   ;;  %s1427_s18 = smov 256  }
  0x3d   : > { %s1428_s17 = smov 16   ;;  %p280_p5 = scmp.lt.s32.totalorder %s1423_s11, 9 }
  0x3e   : > { %1161 = dma.hbm_to_vmem [thread:$0]  (!%p1582_p4), %s1589_s29, 1024, %s1578_s6, %s1592_s15, %s1426_s23, %s1427_s18, %s1428_s17  }
  0x3f   : > { %p1864_p3 = scmp.ge.s32.totalorder %s1423_s11, 1 }
  0x41   : > { %p281_p9 = pnand %p1864_p3, %p280_p5 }
  0x42   : > { %s286_s21 = sand.u32 (!%p281_p9), 1, %s1399_s28  }
  0x43   : > { %284 = sbr.rel (%p281_p9) target bundleno = 891 (0x37b), region = 48  ;;  %s1101_s22 = sshll.u32 (!%p281_p9), %s286_s21, 6 }
  0x44   : > { %s287_s12 = scalar_lea.sflag (!%p281_p9), [#allocation4], %s286_s21  ;;  %s290_s19 = scalar_lea.vmem (!%p281_p9), [#allocation3], %s1101_s22 }
  0x4a   : > { %1374 = dma.done.wait (%p1550_p7), %s287_s12, 1024  }
  0x4b   : > { %1376 = vsyncadd (%p1550_p7), %s287_s12, 4294966272  ;;  %s321_s6 = sand.u32 1, %s1387_s25   ;;  %p324_p12 = scmp.lt.s32.totalorder %s1411_s8, 1 }
  0x4c   : > { %s1639_s14 = scalar_lea.vmem [#allocation6], %s321_s6  ;;  %p1102_p2 = scmp.ne.s32.totalorder %s1407_s30, 0 }
  0x4d   : > { %s1631_s29 = scalar_select %p324_p12, %s1411_s8, 1 }
  0x4e   : > { %330 = sbr.rel (%p1102_p2) target bundleno = 85 (0x55), region = 56  ;;  %vm331_vm0 = vcmask (!%p1102_p2), 253952   ;;  %v1429_v0 = vmov (!%p1102_p2), 0.0  }
  0x4f   : > { %s326_s13 = scalar_lea.vmem %s1838_s1, %s1631_s29  ;;  %332 = vst.msk [vmem:[#allocation2] sm:$0x1] (!%p1102_p2), %vm331_vm0, %v1429_v0 }
  0x55 PF: > { %v334_v1 = vld [vmem:[%s290_s19] sm:$0xff]  ;;  %v335_v2 = vld [vmem:[%s290_s19 + $0x8] sm:$0xff]  ;;  %v336_v3 = vld [vmem:[%s290_s19 + $0x10] sm:$0xff]  ;;  %v1430_v13 = vmov 0   ;;  %v358_v14 = vlaneseq  ;;  %v1431_v15 = vmov 1966171168  }
  0x56   : > { %v342_v4 = vadd.f32 %v335_v2, %v334_v1  ;;  %v337_v5 = vld [vmem:[%s290_s19 + $0x18] sm:$0xff]  ;;  %v338_v6 = vld [vmem:[%s290_s19 + $0x20] sm:$0xff]  ;;  %v339_v7 = vld [vmem:[%s290_s19 + $0x28] sm:$0xff]  ;;  %1265 = vset.pattern.permute.xlu0 %v1430_v13  ;;  %1266 = vset.pattern.permute.xlu1 %v1430_v13  ;;  %v491_v16 = vunpack.c.l.s4 %v1431_v15  ;;  %vm705_vm1 = vcmask 130112   ;;  %vm712_vm2 = vcmask 195712   ;;  %p1103_p7 = scmp.ne.s32.totalorder %s1407_s30, 3 }
  0x57   : > { %v348_v8 = vadd.f32 %v339_v7, %v338_v6  ;;  %v340_v9 = vld [vmem:[%s290_s19 + $0x30] sm:$0xff]  ;;  %v341_v10 = vld [vmem:[%s290_s19 + $0x38] sm:$0xff]  ;;  %v345_v11 = vadd.f32 %v337_v5, %v336_v3  ;;  %v1643_v17 = vshrl.u32 %v358_v14, 7  ;;  %vm719_vm3 = vcmask 261312   ;;  %s1865_s30 = sld [smem:[#allocation14_spill]] (!%p1103_p7) }
  0x58   : > { %343 = vadd.xlane.f32.xlu0 %v342_v4  ;;  %v351_v12 = vadd.f32 %v341_v10, %v340_v9  ;;  %v492_v18 = vunpack.c.0.s8 %v491_v16  ;;  %vm737_vm4 = vcmask 253952   ;;  %vm1433_vm5 = vmmov (!%p1103_p7), 0  }
  0x59   : > { %349 = vadd.xlane.f32.xlu1 %v348_v8  ;;  %v1646_v19 = vsub.s32 0, %v1643_v17  ;;  %v1649_v20 = vsub.s32 1, %v1643_v17  ;;  %v1652_v21 = vsub.s32 2, %v1643_v17  ;;  %v1655_v22 = vsub.s32 3, %v1643_v17 }
  0x5a   : > { %v1658_v23 = vsub.s32 4, %v1643_v17  ;;  %v1661_v24 = vsub.s32 5, %v1643_v17  ;;  %v1664_v25 = vsub.s32 6, %v1643_v17  ;;  %v1667_v26 = vsub.s32 7, %v1643_v17 }
  0x5b   : > { %v1670_v28 = vsub.s32 %v492_v18, %v1643_v17  ;;  %vm826_vm6 = vcmask (!%p1103_p7), 130048   ;;  %vm752_vm7 = vcmask (!%p1103_p7), 261120   ;;  %vm909_vm8 = vcmask (!%p1103_p7), 1041408  }
  0x5c   : > { %346 = vadd.xlane.f32.xlu0 %v345_v11  ;;  %vm905_vm9 = vcmask (!%p1103_p7), 15360  }
  0x5d   : > { %352 = vadd.xlane.f32.xlu1 %v351_v12 }
  0xe5   : > { %v344_v27 = vpop.xlane.xlu0 %343 }
  0xe6   : > { %v350_v29 = vpop.xlane.xlu1 %349  ;;  %v361_v30 = vrot.slane %v344_v27, %v1646_v19  ;;  %v365_v31 = vrot.slane %v344_v27, %v1649_v20  ;;  %v369_v32 = vrot.slane %v344_v27, %v1652_v21  ;;  %v373_v33 = vrot.slane %v344_v27, %v1655_v22 }
  0xe7   : > { %v377_v34 = vrot.slane %v344_v27, %v1658_v23  ;;  %v381_v35 = vrot.slane %v344_v27, %v1661_v24  ;;  %v385_v36 = vrot.slane %v344_v27, %v1664_v25  ;;  %v389_v37 = vrot.slane %v344_v27, %v1667_v26 }
  0xe8   : > { %v486_v38 = vcombine.low %v361_v30, %v365_v31  ;;  %v487_v39 = vcombine.low %v369_v32, %v373_v33  ;;  %v425_v40 = vrot.slane %v350_v29, %v1646_v19  ;;  %v429_v41 = vrot.slane %v350_v29, %v1649_v20 }
  0xe9   : > { %v347_v42 = vpop.xlane.xlu0 %346  ;;  %v488_v43 = vcombine.low %v377_v34, %v381_v35  ;;  %v489_v44 = vcombine.low %v385_v36, %v389_v37  ;;  %v433_v45 = vrot.slane %v350_v29, %v1652_v21  ;;  %v437_v46 = vrot.slane %v350_v29, %v1655_v22 }
  0xea   : > { %v496_v47 = vrot.slane %v486_v38, %v1670_v28  ;;  %v503_v48 = vrot.slane %v487_v39, %v1670_v28  ;;  %v393_v49 = vrot.slane %v347_v42, %v1646_v19  ;;  %v397_v50 = vrot.slane %v347_v42, %v1649_v20  ;;  %v353_v3 = vpop.xlane.xlu1 %352 }
  0xeb   : > { %v510_v51 = vrot.slane %v488_v43, %v1670_v28  ;;  %v517_v52 = vrot.slane %v489_v44, %v1670_v28  ;;  %v401_v53 = vrot.slane %v347_v42, %v1652_v21  ;;  %v405_v54 = vrot.slane %v347_v42, %v1655_v22 }
  0xec   : > { %v518_v55 = vcombine.low %v496_v47, %v503_v48  ;;  %v409_v56 = vrot.slane %v347_v42, %v1658_v23  ;;  %v413_v57 = vrot.slane %v347_v42, %v1661_v24  ;;  %v417_v58 = vrot.slane %v347_v42, %v1664_v25 }
  0xed   : > { %v519_v59 = vcombine.low %v510_v51, %v517_v52  ;;  %v421_v60 = vrot.slane %v347_v42, %v1667_v26  ;;  %v535_v61 = vcombine.low %v393_v49, %v397_v50  ;;  %v536_v62 = vcombine.low %v401_v53, %v405_v54 }
  0xee   : > { %v526_v63 = vrot.slane %v518_v55, %v1670_v28  ;;  %v537_v0 = vcombine.low %v409_v56, %v413_v57  ;;  %v441_v1 = vrot.slane %v350_v29, %v1658_v23  ;;  %v445_v2 = vrot.slane %v350_v29, %v1661_v24 }
  0xef   : > { %v533_v4 = vrot.slane %v519_v59, %v1670_v28  ;;  %v538_v5 = vcombine.low %v417_v58, %v421_v60  ;;  %v545_v6 = vrot.slane %v535_v61, %v1670_v28  ;;  %v552_v7 = vrot.slane %v536_v62, %v1670_v28 }
  0xf0   : > { %v559_v8 = vrot.slane %v537_v0, %v1670_v28  ;;  %v449_v9 = vrot.slane %v350_v29, %v1664_v25  ;;  %v453_v10 = vrot.slane %v350_v29, %v1667_v26  ;;  %v584_v11 = vcombine.low %v425_v40, %v429_v41 }
  0xf1   : > { %v534_v12 = vcombine.low %v526_v63, %v533_v4  ;;  %v566_v13 = vrot.slane %v538_v5, %v1670_v28  ;;  %v567_v15 = vcombine.low %v545_v6, %v552_v7  ;;  %v585_v16 = vcombine.low %v433_v45, %v437_v46 }
  0xf2   : > { %v586_v18 = vcombine.low %v441_v1, %v445_v2  ;;  %v587_v27 = vcombine.low %v449_v9, %v453_v10  ;;  %v594_v30 = vrot.slane %v584_v11, %v1670_v28  ;;  %v457_v31 = vrot.slane %v353_v3, %v1646_v19  ;;  %v333_v10 = vld [vmem:[#allocation2] sm:$0x1] }
  0xf3   : > { %683 = vperm.xlu0 %1265, %v534_v12   ;;  %v568_v32 = vcombine.low %v559_v8, %v566_v13  ;;  %v575_v33 = vrot.slane %v567_v15, %v1670_v28  ;;  %v601_v34 = vrot.slane %v585_v16, %v1670_v28  ;;  %v461_v29 = vrot.slane %v353_v3, %v1649_v20  ;;  %v749_v13 = vld [vmem:[%s1840_s3 + $0x8] sm:$0xff] (!%p1103_p7)  ;;  %v746_v15 = vld [vmem:[%s1839_s2] sm:$0xff] (!%p1103_p7) }
  0xf4   : > { %v608_v35 = vrot.slane %v586_v18, %v1670_v28  ;;  %v615_v36 = vrot.slane %v587_v27, %v1670_v28  ;;  %v465_v37 = vrot.slane %v353_v3, %v1652_v21  ;;  %v469_v38 = vrot.slane %v353_v3, %v1655_v22  ;;  %v747_v18 = vld [vmem:[%s1839_s2 + $0x8] sm:$0xff] (!%p1103_p7)  ;;  %v750_v27 = vld [vmem:[%s1840_s3 + $0x10] sm:$0xff] (!%p1103_p7) }
  0xf5   : > { %v582_v39 = vrot.slane %v568_v32, %v1670_v28  ;;  %v616_v40 = vcombine.low %v594_v30, %v601_v34  ;;  %v473_v19 = vrot.slane %v353_v3, %v1658_v23  ;;  %v477_v41 = vrot.slane %v353_v3, %v1661_v24  ;;  %v751_v30 = vld [vmem:[%s1840_s3 + $0x18] sm:$0xff] (!%p1103_p7) }
  0xf6   : > { %v617_v42 = vcombine.low %v608_v35, %v615_v36  ;;  %v481_v43 = vrot.slane %v353_v3, %v1664_v25  ;;  %v485_v20 = vrot.slane %v353_v3, %v1667_v26  ;;  %v633_v44 = vcombine.low %v457_v31, %v461_v29  ;;  %v745_v29 = vld [vmem:[%s326_s13] sm:$0x1] (!%p1103_p7) }
  0xf7   : > { %v583_v45 = vcombine.low %v575_v33, %v582_v39  ;;  %v624_v46 = vrot.slane %v616_v40, %v1670_v28  ;;  %v634_v47 = vcombine.low %v465_v37, %v469_v38  ;;  %v635_v21 = vcombine.low %v473_v19, %v477_v41  ;;  %v903_v36 = vld [vmem:[%s1842_s5] sm:$0x3] (!%p1103_p7) }
  0xf8   : > { %v631_v22 = vrot.slane %v617_v42, %v1670_v28  ;;  %v636_v48 = vcombine.low %v481_v43, %v485_v20  ;;  %v643_v49 = vrot.slane %v633_v44, %v1670_v28  ;;  %v695_v55 = vand.u32 127, %v358_v14  ;;  %v900_v40 = vld [vmem:[%s1841_s4] sm:$0x1] (!%p1103_p7) }
  0xf9   : > { %686 = vperm.xlu1 %1266, %v583_v45   ;;  %v650_v23 = vrot.slane %v634_v47, %v1670_v28  ;;  %v657_v24 = vrot.slane %v635_v21, %v1670_v28  ;;  %v1152_v31 = vpack.c.bf16 (!%p1103_p7), %v747_v18, %v746_v15  ;;  %v1434_v32 = vmov (!%p1103_p7), 0.0   ;;  %v904_v20 = vld [vmem:[%s1865_s30] sm:$0x1] (!%p1103_p7) }
  0xfa   : > { %v632_v50 = vcombine.low %v624_v46, %v631_v22  ;;  %v664_v25 = vrot.slane %v636_v48, %v1670_v28  ;;  %v700_v56 = vadd.s32 4294967288, %v695_v55  ;;  %v707_v57 = vadd.s32 4294967280, %v695_v55  ;;  %1137 = vmatprep.mubr.msk.f32.mxu1 (!%p1103_p7), %vm1433_vm5, %v1434_v32  ;;  %1130 = vmatprep.mubr.msk.f32.mxu0 (!%p1103_p7), %vm1433_vm5, %v1434_v32 }
  0xfb   : > { %v665_v26 = vcombine.low %v643_v49, %v650_v23  ;;  %v714_v60 = vadd.s32 4294967272, %v695_v55  ;;  %v698_v62 = vsub.s32 %v695_v55, %v1643_v17  ;;  %v1149_v33 = vpack.c.bf16 (!%p1103_p7), %v751_v30, %v750_v27 }
  0xfc   : > { %v666_v51 = vcombine.low %v657_v24, %v664_v25  ;;  %v703_v59 = vsub.s32 %v700_v56, %v1643_v17  ;;  %v710_v61 = vsub.s32 %v707_v57, %v1643_v17 }
  0xfd   : > { %689 = vperm.xlu1 %1266, %v632_v50   ;;  %v673_v52 = vrot.slane %v665_v26, %v1670_v28  ;;  %v717_v2 = vsub.s32 %v714_v60, %v1643_v17  ;;  %v748_v17 = vld [vmem:[%s1840_s3] sm:$0xff] (!%p1103_p7) }
  0xfe   : > { %v680_v53 = vrot.slane %v666_v51, %v1670_v28  ;;  %v1146_v16 = vpack.c.bf16 (!%p1103_p7), %v749_v13, %v748_v17 }
 0x100   : > { %v681_v54 = vcombine.low %v673_v52, %v680_v53 }
 0x102   : > { %692 = vperm.xlu1 %1266, %v681_v54  }
 0x172   : > { %v684_v0 = vpop.permute.xlu0 %683 }
 0x173   : > { %v699_v4 = vrot.slane %v684_v0, %v698_v62 }
 0x178   : > { %v687_v58 = vpop.permute.xlu1 %686 }
 0x179   : > { %v704_v1 = vrot.slane %v687_v58, %v703_v59 }
 0x17b   : > { %v706_v5 = vsel %vm705_vm1, %v704_v1, %v699_v4 }
 0x17c   : > { %v690_v63 = vpop.permute.xlu1 %689 }
 0x17d   : > { %v711_v3 = vrot.slane %v690_v63, %v710_v61 }
 0x17f   : > { %v713_v7 = vsel %vm712_vm2, %v711_v3, %v706_v5 }
 0x181   : > { %v693_v14 = vpop.permute.xlu1 %692 }
 0x182   : > { %v718_v6 = vrot.slane %v693_v14, %v717_v2 }
 0x184   : > { %v720_v8 = vsel %vm719_vm3, %v718_v6, %v713_v7 }
 0x185   : > { %v727_v9 = vrot.slane %v720_v8, %v1670_v28  ;;  %742 = sbr.rel (%p1103_p7) target bundleno = 864 (0x360), region = 60 }
 0x187   : > { %v734_v11 = vrot.slane %v727_v9, %v1670_v28  ;;  %v1432_v28 = vmov (!%p1103_p7), 0.0|0.0  }
 0x188   : > { %1145 = vmatprep.subr.bf16.mxu0 (!%p1103_p7), %v1432_v28  ;;  %1151 = vmatprep.subr.bf16.mxu1 (!%p1103_p7), %v1432_v28 }
 0x189   : > { %v736_v12 = vadd.f32 %v734_v11, %v333_v10  ;;  %1147 = vmatpush3.bf16.msra.mxu0 (!%p1103_p7), %v1146_v16  ;;  %1153 = vmatpush3.bf16.msra.mxu1 (!%p1103_p7), %v1152_v31 }
 0x18a   : > { %1148 = vmatprep.subr.bf16.mxu0 (!%p1103_p7), %v1432_v28  ;;  %1140 = vmatprep.subr.mxu1 (!%p1103_p7), %v1434_v32 }
 0x18b   : > { %738 = vst.msk [vmem:[#allocation2] sm:$0x1] %vm737_vm4, %v736_v12 }
 0x18c   : > { %1138 = vmatmul.mubr.msk.f32.vlgmr.msra.gmra.mrb[0].mxu1 %vm826_vm6, %v745_v29 }
 0x18d   : > { %1150 = vmatpush3.bf16.msra.mxu0 %v1149_v33  ;;  %1142 = vmatprep.mubr.msk.f32.mxu1 %vm1433_vm5, %v1434_v32 }
 0x18e   : > { %1141 = vmatpush3.msk.msra.mxu1 %vm909_vm8, %v903_v36 }
 0x192   : > { %v743_v34 = vld [vmem:[#allocation2] sm:$0x1] }
 0x193   : > { %v744_v35 = vmul.f32 0.0009765625, %v743_v34 }
 0x195   : > { %1131 = vmatmul.mubr.msk.f32.vlgmr.msra.gmra.mrb[0].mxu0 %vm752_vm7, %v744_v35 }
 0x25f   : > { %v896_v37 = vpop.f32.mrb[0].mxu1 }
 0x260   : > { %v1139_v38 = vpop.f32.mrb[1].mxu1 }
 0x268   : > { %v822_v39 = vpop.f32.mrb[0].mxu0 }
 0x269   : > { %v897_v19 = vadd.f32 %v896_v37, %v822_v39  ;;  %v1132_v41 = vpop.f32.mrb[1].mxu0 }
 0x26b   : > { %v901_v42 = vadd.f32 %v900_v40, %v897_v19 }
 0x26d   : > { %v902_v43 = vmax.f32 %v901_v42, 0.0 }
 0x26f   : > { %1143 = vmatmul.mubr.msk.f32.vlgmr.msra.gmra.mrb[2].mxu1 %vm905_vm9, %v902_v43 }
 0x342   : > { %v979_v44 = vpop.f32.mrb[2].mxu1 }
 0x343   : > { %v980_v45 = vadd.f32 %v979_v44, %v904_v20  ;;  %v1144_v46 = vpop.f32.mrb[3].mxu1 }
 0x345   : > { %v1108_v47 = vmul.f32 -1.442695, %v980_v45 }
 0x347   : > { %1267 = vpow2.f32 %v1108_v47 }
 0x351   : > { %v1268_v21 = vpop.eup %1267 }
 0x352   : > { %v986_v22 = vadd.f32 1.0, %v1268_v21 }
 0x354   : > { %1269 = vrcp.f32 %v986_v22 }
 0x35e   : > { %v1270_v48 = vpop.eup %1269 }
 0x35f   : > { %989 = vst.msk [vmem:[%s1639_s14] sm:$0x1] %vm737_vm4, %v1270_v48 }
 0x360 PF: > { %s1866_s19 = sld [smem:[#allocation12_spill]]  ;;  %s1109_s16 = sshll.u32 %s1411_s8, 4 }
 0x361   : > { %s1867_s23 = sld [smem:[#allocation15_spill]]  ;;  %s1003_s17 = sshll.u32 %s1639_s14, 4  ;;  %s1004_s17 = int_to_ptr.vmem [resolvable:$true] %s1003_s17 }
 0x362   : > { %s991_s21 = scalar_lea.sflag [#allocation5], %s321_s6  ;;  %s1301_s29 = scalar_lea.vmem %s1004_s17, 16 }
 0x363   : > { %p1302_p4 = scmp.ne.s32.totalorder %s1004_s17, %s1301_s29  ;;  %s1435_s13 = smov [#allocation6]  }
 0x364   : > { %s1305_s22 = sshll.u32 %s1435_s13, 4  ;;  %s1306_s22 = int_to_ptr.vmem [resolvable:$false] %s1305_s22 }
 0x365   : > { %s1307_s12 = scalar_lea.vmem %s1306_s22, 32  ;;  %p1308_p8 = scmp.lt.s32.totalorder %s1004_s17, %s1306_s22 }
 0x366   : > { %p1868_p0 = scmp.ne.s32.totalorder %s1866_s19, 0  ;;  %p1309_p10 = scmp.lt.s32.totalorder %s1307_s12, %s1301_s29 }
 0x367   : > { %s1778_s18 = scalar_lea.hbm %s1867_s23, %s1109_s16 }
 0x368   : > { %p1303_p1 = pnand %p1302_p4, %p1868_p0  ;;  %p1310_p11 = por %p1309_p10, %p1308_p8 }
 0x36a   : > { %p1304_p6 = pneg %p1303_p1 }
 0x36c   : > { %p1311_p13 = pnand %p1310_p11, %p1304_p6 }
 0x36e   : > { %1314 = shalt.err (!%p1311_p13)
}
 0x36f   : > { %s1315_s8 = scalar_lea.hbm %s1778_s18, 16  ;;  %s1319_s30 = scalar_lea.hbm %s1867_s23, 32 }
 0x370   : > { %p1316_p5 = scmp.ne.s32.totalorder %s1778_s18, %s1315_s8  ;;  %p1320_p12 = scmp.lt.u32.totalorder %s1778_s18, %s1867_s23 }
 0x371   : > { %p1321_p2 = scmp.lt.u32.totalorder %s1319_s30, %s1315_s8  ;;  %p1323_p4 = scmp.lt.u32.totalorder %s1315_s8, %s1778_s18 }
 0x372   : > { %p1317_p3 = pnand %p1316_p5, %p1868_p0 }
 0x373   : > { %p1322_p7 = por %p1321_p2, %p1320_p12 }
 0x374   : > { %p1318_p9 = pneg %p1317_p3 }
 0x375   : > { %p1324_p1 = por %p1323_p4, %p1322_p7 }
 0x377   : > { %p1325_p6 = pnand %p1324_p1, %p1318_p9 }
 0x379   : > { %1328 = shalt.err (!%p1325_p6)
}
 0x37a   : > { %1156 = dma.vmem_to_hbm [thread:$0]  (%p1868_p0), %s1004_s17, 16, %s1778_s18, %s991_s21  }
 0x37b PF: > { %p1167_p8 = scmp.ge.s32.totalorder %s1423_s11, 2  ;;  %s1015_s20 = sand.u32 1, %s1383_s24  }
 0x37c   : > { %p1869_p10 = scmp.ne.s32.totalorder %s1862_s7, 0  ;;  %s1016_s29 = scalar_lea.sflag [#allocation5], %s1015_s20 }
 0x37e   : > { %p1163_p11 = pnand %p1167_p8, %p1869_p10 }
 0x380   : > { %1378 = dma.done.wait (!%p1163_p11), %s1016_s29, 16  }
 0x381   : > { %1380 = vsyncadd (!%p1163_p11), %s1016_s29, 4294967280  ;;  %s23_s11 = sadd.s32 1, %s1423_s11   ;;  %s1870_s19 = sld [smem:[#allocation9_spill]] }
 0x382   : > { %p20_p13 = scmp.ge.s32.totalorder %s23_s11, 10   ;;  %s1871_s29 = sld [smem:[#allocation13_spill]] }
 0x383   : > { %s1872_s18 = sld [smem:[#allocation10_spill]]  ;;  %s1873_s17 = sld [smem:[#allocation11_spill]] }
 0x384   : > { %s1874_s24 = smov %s1387_s25  ;;  %s1875_s25 = smov %s1391_s26 }
 0x385   : > { %s1876_s26 = smov %s1563_s27  ;;  %s1877_s27 = smov %s1399_s28 }
 0x386   : > { %s1879_s30 = smov %s1415_s9  ;;  %s1880_s8 = smov %s1419_s10 }
 0x387   : > { %s1878_s28 = smov %s1870_s19  ;;  %22 = sbr.rel (!%p20_p13) target bundleno = 12 (0xc), region = 104 }
 0x389   : > { %s1881_s9 = smov %s1872_s18  ;;  %s1882_s10 = smov %s1873_s17 }
 0x38e   :  { %1020 = vsyncpa [#allocation4], 1 }
 0x38f   :  { %1022 = vsyncpa [#allocation4 + $0x1], 1 }
 0x390   :  { %1023 = vsyncpa [#allocation5], 1 }
 0x391   :  { %1025 = vsyncpa [#allocation5 + $0x1], 1 }

</bundles_post_ra>
